<compile_context>
chip_gen: v7x
topology: tpu7x:2x2x1
jax: 0.10.0
libtpu: 0.0.40
codegen_flags: <defaults>
</compile_context>

<pallas_src>
import functools

import jax
import jax.numpy as jnp
from jax.experimental import pallas as pl
from jax.experimental.pallas import tpu as pltpu


def _round_up(a: int, b: int) -> int:
    return ((a + b - 1) // b) * b


def _vmem_capacity_bytes() -> int:
    try:
        return int(pltpu.get_tpu_info().vmem_capacity_bytes)
    except Exception:
        return 64 << 20  # conservative: v7x per-TensorCore VMEM


def _swiglu_resident_kernel(x_ref, w1_ref, w2_ref, b1_ref, b2_ref, w3_ref,
                            b3_ref, o_ref):
    # x_ref: (tm, D);  w1/w2: (D, H) whole-array VMEM;  w3: (H, Dout) whole.
    x = x_ref[...]
    x1 = jnp.dot(x, w1_ref[...], preferred_element_type=jnp.float32)
    x1 = x1 + b1_ref[...].astype(jnp.float32)
    x2 = jnp.dot(x, w2_ref[...], preferred_element_type=jnp.float32)
    x2 = x2 + b2_ref[...].astype(jnp.float32)
    hidden = (x1 * jax.nn.sigmoid(x1)) * x2           # SwiGLU gate in f32
    out = jnp.dot(hidden.astype(w3_ref.dtype), w3_ref[...],
                  preferred_element_type=jnp.float32)
    o_ref[...] = (out + b3_ref[...].astype(jnp.float32)).astype(o_ref.dtype)


def _swiglu_stream_kernel(x_ref, w1_ref, w2_ref, b1_ref, b2_ref, w3_ref,
                          b3_ref, o_ref, acc_ref):
    # x_ref: (tm, D) resident across the hidden axis.
    # w1/w2: (D, th) slabs;  b1/b2: (1, th);  w3: (th, Dout);  b3: (1, Dout).
    # acc_ref: (tm, Dout) f32 accumulator scratch.
    j = pl.program_id(1)

    x = x_ref[...]
    x1 = jnp.dot(x, w1_ref[...], preferred_element_type=jnp.float32)
    x1 = x1 + b1_ref[...].astype(jnp.float32)
    x2 = jnp.dot(x, w2_ref[...], preferred_element_type=jnp.float32)
    x2 = x2 + b2_ref[...].astype(jnp.float32)
    hidden = (x1 * jax.nn.sigmoid(x1)) * x2
    contrib = jnp.dot(hidden.astype(w3_ref.dtype), w3_ref[...],
                      preferred_element_type=jnp.float32)

    @pl.when(j == 0)
    def _():
        acc_ref[...] = contrib          # no zero-fill pass

    @pl.when(j > 0)
    def _():
        acc_ref[...] += contrib

    @pl.when(j == pl.num_programs(1) - 1)
    def _():
        o_ref[...] = (acc_ref[...] + b3_ref[...].astype(jnp.float32)
                      ).astype(o_ref.dtype)


@functools.partial(jax.jit, static_argnames=("tm", "th", "force_stream"))
def swiglu_ffn(x, w12, b12, w3, b3, *, tm=512, th=512, force_stream=False):
    """SwiGLU FFN forward.

    x:   (B, N, D)
    w12: (2H, D),  b12: (2H,)    -- torch nn.Linear(in, 2*hidden) params
    w3:  (Dout, H), b3: (Dout,)  -- torch nn.Linear(hidden, out) params
    """
    B, N, D = x.shape
    H = w12.shape[0] // 2
    Dout = w3.shape[0]
    M = B * N

    # One-time layout change: torch (out, in) -> (in, out).  Contiguous row
    # slices + a single HBM transpose, amortized over every token tile; every
    # in-kernel dot then contracts lhs lane axis against rhs sublane axis.
    w1t = w12[:H].T                      # (D, H)
    w2t = w12[H:].T                      # (D, H)
    w3t = w3.T                           # (H, Dout)
    b1 = b12[:H].reshape(1, H)
    b2 = b12[H:].reshape(1, H)
    b3_2d = b3.reshape(1, Dout)

    x2d = x.reshape(M, D)

    dsz = jnp.dtype(x.dtype).itemsize
    wsz = jnp.dtype(w12.dtype).itemsize

    tm_eff = min(_round_up(tm, 8), _round_up(M, 8))
    grid_m = pl.cdiv(M, tm_eff)

    cap = _vmem_capacity_bytes()
    budget = cap - (6 << 20)             # headroom for compiler scratch

    weight_bytes = (2 * H * D + H * Dout) * wsz + (2 * H + Dout) * wsz
    resident_bytes = (
        weight_bytes                      # all weights, single copy
        + 2 * tm_eff * D * dsz            # double-buffered x tile
        + 2 * tm_eff * Dout * dsz         # double-buffered output tile
        + 3 * tm_eff * H * 4              # f32 intermediates (x1, x2, hidden)
    )
    use_resident = (not force_stream) and (resident_bytes <= budget)

    if use_resident:
        # ---------------- Resident-weights path ----------------
        vmem_limit = int(min(max(resident_bytes + (4 << 20), 32 << 20), budget))
        out2d = pl.pallas_call(
            _swiglu_resident_kernel,
            out_shape=jax.ShapeDtypeStruct((M, Dout), x.dtype),
            grid_spec=pltpu.PrefetchScalarGridSpec(
                num_scalar_prefetch=0,
                grid=(grid_m,),
                in_specs=[
                    pl.BlockSpec((tm_eff, D), lambda i: (i, 0)),          # x
                    pl.BlockSpec(memory_space=pltpu.MemorySpace.VMEM),    # w1t
                    pl.BlockSpec(memory_space=pltpu.MemorySpace.VMEM),    # w2t
                    pl.BlockSpec(memory_space=pltpu.MemorySpace.VMEM),    # b1
                    pl.BlockSpec(memory_space=pltpu.MemorySpace.VMEM),    # b2
                    pl.BlockSpec(memory_space=pltpu.MemorySpace.VMEM),    # w3t
                    pl.BlockSpec(memory_space=pltpu.MemorySpace.VMEM),    # b3
                ],
                out_specs=pl.BlockSpec((tm_eff, Dout), lambda i: (i, 0)),
            ),
            compiler_params=pltpu.CompilerParams(
                dimension_semantics=("parallel",),
                vmem_limit_bytes=vmem_limit,
            ),
        )(x2d, w1t, w2t, b1, b2, w3t, b3_2d)
        return out2d.reshape(B, N, Dout)

    # ---------------- Streaming (hidden-slab) fallback ----------------
    # Zero-pad the hidden dim up to a multiple of the slab width.  Padded
    # columns give x1 = x2 = 0 -> hidden = 0, and the padded w3 rows are zero,
    # so they contribute exactly 0 to the accumulation.
    th_eff = min(_round_up(th, 128), _round_up(H, 128))
    Hp = _round_up(H, th_eff)
    if Hp != H:
        pad = Hp - H
        w1t = jnp.pad(w1t, ((0, 0), (0, pad)))
        w2t = jnp.pad(w2t, ((0, 0), (0, pad)))
        b1 = jnp.pad(b1, ((0, 0), (0, pad)))
        b2 = jnp.pad(b2, ((0, 0), (0, pad)))
        w3t = jnp.pad(w3t, ((0, pad), (0, 0)))

    grid = (grid_m, Hp // th_eff)

    stream_bytes = (
        2 * tm_eff * D * dsz              # x tile (double-buffered)
        + 2 * 2 * D * th_eff * wsz        # w1t, w2t slabs
        + 2 * 2 * th_eff * wsz            # b1, b2 slabs
        + 2 * th_eff * Dout * wsz         # w3t slab
        + 2 * Dout * wsz                  # b3
        + 2 * tm_eff * Dout * dsz         # output tile
        + tm_eff * Dout * 4               # f32 accumulator
        + 3 * tm_eff * th_eff * 4         # f32 intermediates
    )
    vmem_limit = int(min(max(int(stream_bytes * 1.25) + (4 << 20), 32 << 20),
                         budget))

    out2d = pl.pallas_call(
        _swiglu_stream_kernel,
        out_shape=jax.ShapeDtypeStruct((M, Dout), x.dtype),
        grid_spec=pltpu.PrefetchScalarGridSpec(
            num_scalar_prefetch=0,
            grid=grid,
            in_specs=[
                pl.BlockSpec((tm_eff, D), lambda i, j: (i, 0)),      # x
                pl.BlockSpec((D, th_eff), lambda i, j: (0, j)),      # w1t slab
                pl.BlockSpec((D, th_eff), lambda i, j: (0, j)),      # w2t slab
                pl.BlockSpec((1, th_eff), lambda i, j: (0, j)),      # b1 slab
                pl.BlockSpec((1, th_eff), lambda i, j: (0, j)),      # b2 slab
                pl.BlockSpec((th_eff, Dout), lambda i, j: (j, 0)),   # w3t slab
                pl.BlockSpec((1, Dout), lambda i, j: (0, 0)),        # b3
            ],
            out_specs=pl.BlockSpec((tm_eff, Dout), lambda i, j: (i, 0)),
            scratch_shapes=[pltpu.VMEM((tm_eff, Dout), jnp.float32)],
        ),
        compiler_params=pltpu.CompilerParams(
            dimension_semantics=("parallel", "arbitrary"),
            vmem_limit_bytes=vmem_limit,
        ),
    )(x2d, w1t, w2t, b1, b2, w3t, b3_2d)

    return out2d.reshape(B, N, Dout)


def _reference(x, w12, b12, w3, b3):
    x12 = jnp.einsum("bnd,hd->bnh", x, w12) + b12
    H = w12.shape[0] // 2
    x1, x2 = x12[..., :H], x12[..., H:]
    hidden = jax.nn.silu(x1) * x2
    return jnp.einsum("bnh,oh->bno", hidden, w3) + b3


if __name__ == "__main__":
    in_features = 64
    hidden_features = 256
    out_features = 64

    key = jax.random.PRNGKey(0)
    kx, k1, k2, k3, k4 = jax.random.split(key, 5)

    # torch nn.Linear layouts: weight = (out, in).
    w12 = 0.02 * jax.random.normal(
        k1, (2 * hidden_features, in_features), dtype=jnp.float32)
    b12 = 0.01 * jax.random.normal(k2, (2 * hidden_features,), dtype=jnp.float32)
    w3 = 0.02 * jax.random.normal(
        k3, (out_features, hidden_features), dtype=jnp.float32)
    b3 = 0.01 * jax.random.normal(k4, (out_features,), dtype=jnp.float32)

    ok = True
    cases = [
        # (B, N, force_stream, th)
        (2, 8, False, 512),   # resident-weights path, even token count
        (2, 9, False, 512),   # resident path, ragged (partial) token tile
        (2, 9, True, 128),    # streamed hidden axis (2 slabs) + ragged tile
    ]
    for B, N, force_stream, th in cases:
        x = jax.random.normal(kx, (B, N, in_features), dtype=jnp.float32)
        out = swiglu_ffn(x, w12, b12, w3, b3, th=th, force_stream=force_stream)
        out = jax.block_until_ready(out)
        ref = _reference(x, w12, b12, w3, b3)
        assert out.shape == (B, N, out_features)
        if not jnp.allclose(out, ref, atol=2e-4, rtol=2e-4):
            ok = False
            print(f"mismatch vs. reference for {(B, N, force_stream, th)}: "
                  f"max err {float(jnp.max(jnp.abs(out - ref)))}")

    if ok:
        print("KERNEL_OK")
</pallas_src>

<mosaic_0001>
module attributes {stable_mosaic.version = 11 : i64} {
  func.func @_swiglu_resident_kernel(%arg0: i32, %arg1: memref<16x64xf32, #tpu.memory_space<vmem>>, %arg2: memref<64x256xf32, #tpu.memory_space<vmem>>, %arg3: memref<64x256xf32, #tpu.memory_space<vmem>>, %arg4: memref<1x256xf32, #tpu.memory_space<vmem>>, %arg5: memref<1x256xf32, #tpu.memory_space<vmem>>, %arg6: memref<256x64xf32, #tpu.memory_space<vmem>>, %arg7: memref<1x64xf32, #tpu.memory_space<vmem>>, %arg8: memref<16x64xf32, #tpu.memory_space<vmem>>) attributes {dimension_semantics = [#tpu.dimension_semantics<parallel>], iteration_bounds = array<i64: 1>, scalar_prefetch = 0 : i64, scratch_operands = 0 : i64, tpu.core_type = #tpu.core_type<tc>, window_params = [{transform_indices = @transform_0, window_bounds = array<i64: 16, 64>}, {pipeline_mode = #tpu.pipeline_mode<synchronous>, transform_indices = @transform_1, window_bounds = array<i64: 64, 256>}, {pipeline_mode = #tpu.pipeline_mode<synchronous>, transform_indices = @transform_2, window_bounds = array<i64: 64, 256>}, {pipeline_mode = #tpu.pipeline_mode<synchronous>, transform_indices = @transform_3, window_bounds = array<i64: 1, 256>}, {pipeline_mode = #tpu.pipeline_mode<synchronous>, transform_indices = @transform_4, window_bounds = array<i64: 1, 256>}, {pipeline_mode = #tpu.pipeline_mode<synchronous>, transform_indices = @transform_5, window_bounds = array<i64: 256, 64>}, {pipeline_mode = #tpu.pipeline_mode<synchronous>, transform_indices = @transform_6, window_bounds = array<i64: 1, 64>}, {transform_indices = @transform_7, window_bounds = array<i64: 16, 64>}]} {
    %c0 = arith.constant 0 : index
    %c0_0 = arith.constant 0 : index
    %0 = vector.load %arg1[%c0, %c0_0] : memref<16x64xf32, #tpu.memory_space<vmem>>, vector<16x64xf32>
    %c0_1 = arith.constant 0 : index
    %c0_2 = arith.constant 0 : index
    %1 = vector.load %arg2[%c0_1, %c0_2] : memref<64x256xf32, #tpu.memory_space<vmem>>, vector<64x256xf32>
    %cst = arith.constant dense<0.000000e+00> : vector<16x256xf32>
    %2 = tpu.matmul %0, %1, %cst {dimension_numbers = #tpu.dot_dimension_numbers<[1], [0], [0], [1], [0, 0, 1, 1], [], []>} : vector<16x64xf32>, vector<64x256xf32>, vector<16x256xf32> -> vector<16x256xf32>
    %c0_3 = arith.constant 0 : index
    %c0_4 = arith.constant 0 : index
    %3 = vector.load %arg4[%c0_3, %c0_4] : memref<1x256xf32, #tpu.memory_space<vmem>>, vector<1x256xf32>
    %4 = vector.broadcast %3 : vector<1x256xf32> to vector<16x256xf32>
    %5 = arith.addf %2, %4 : vector<16x256xf32>
    %c0_5 = arith.constant 0 : index
    %c0_6 = arith.constant 0 : index
    %6 = vector.load %arg3[%c0_5, %c0_6] : memref<64x256xf32, #tpu.memory_space<vmem>>, vector<64x256xf32>
    %cst_7 = arith.constant dense<0.000000e+00> : vector<16x256xf32>
    %7 = tpu.matmul %0, %6, %cst_7 {dimension_numbers = #tpu.dot_dimension_numbers<[1], [0], [0], [1], [0, 0, 1, 1], [], []>} : vector<16x64xf32>, vector<64x256xf32>, vector<16x256xf32> -> vector<16x256xf32>
    %c0_8 = arith.constant 0 : index
    %c0_9 = arith.constant 0 : index
    %8 = vector.load %arg5[%c0_8, %c0_9] : memref<1x256xf32, #tpu.memory_space<vmem>>, vector<1x256xf32>
    %9 = vector.broadcast %8 : vector<1x256xf32> to vector<16x256xf32>
    %10 = arith.addf %7, %9 : vector<16x256xf32>
    %11 = arith.negf %5 : vector<16x256xf32>
    %12 = math.exp %11 : vector<16x256xf32>
    %cst_10 = arith.constant 1.000000e+00 : f32
    %13 = vector.broadcast %cst_10 : f32 to vector<16x256xf32>
    %14 = arith.addf %13, %12 : vector<16x256xf32>
    %15 = arith.divf %13, %14 : vector<16x256xf32>
    %16 = arith.mulf %5, %15 : vector<16x256xf32>
    %17 = arith.mulf %16, %10 : vector<16x256xf32>
    %c0_11 = arith.constant 0 : index
    %c0_12 = arith.constant 0 : index
    %18 = vector.load %arg6[%c0_11, %c0_12] : memref<256x64xf32, #tpu.memory_space<vmem>>, vector<256x64xf32>
    %cst_13 = arith.constant dense<0.000000e+00> : vector<16x64xf32>
    %19 = tpu.matmul %17, %18, %cst_13 {dimension_numbers = #tpu.dot_dimension_numbers<[1], [0], [0], [1], [0, 0, 1, 1], [], []>} : vector<16x256xf32>, vector<256x64xf32>, vector<16x64xf32> -> vector<16x64xf32>
    %c0_14 = arith.constant 0 : index
    %c0_15 = arith.constant 0 : index
    %20 = vector.load %arg7[%c0_14, %c0_15] : memref<1x64xf32, #tpu.memory_space<vmem>>, vector<1x64xf32>
    %21 = vector.broadcast %20 : vector<1x64xf32> to vector<16x64xf32>
    %22 = arith.addf %19, %21 : vector<16x64xf32>
    %c0_16 = arith.constant 0 : index
    %c0_17 = arith.constant 0 : index
    %23 = vector.load %arg8[%c0_16, %c0_17] : memref<16x64xf32, #tpu.memory_space<vmem>>, vector<16x64xf32>
    tpu.vector_store %arg8[%c0_16, %c0_17], %22 {strides = array<i32>} : memref<16x64xf32, #tpu.memory_space<vmem>>, vector<16x64xf32>,
    return
  }
  func.func @transform_0(%arg0: i32) -> (i32, i32) {
    %c0_i32 = arith.constant 0 : i32
    %c0_i32_0 = arith.constant 0 : i32
    return %arg0, %c0_i32 : i32, i32
  }
  func.func @transform_1(%arg0: i32) -> (i32, i32) {
    %c0_i32 = arith.constant 0 : i32
    %c0_i32_0 = arith.constant 0 : i32
    %c0_i32_1 = arith.constant 0 : i32
    return %c0_i32, %c0_i32_0 : i32, i32
  }
  func.func @transform_2(%arg0: i32) -> (i32, i32) {
    %c0_i32 = arith.constant 0 : i32
    %c0_i32_0 = arith.constant 0 : i32
    %c0_i32_1 = arith.constant 0 : i32
    return %c0_i32, %c0_i32_0 : i32, i32
  }
  func.func @transform_3(%arg0: i32) -> (i32, i32) {
    %c0_i32 = arith.constant 0 : i32
    %c0_i32_0 = arith.constant 0 : i32
    %c0_i32_1 = arith.constant 0 : i32
    return %c0_i32, %c0_i32_0 : i32, i32
  }
  func.func @transform_4(%arg0: i32) -> (i32, i32) {
    %c0_i32 = arith.constant 0 : i32
    %c0_i32_0 = arith.constant 0 : i32
    %c0_i32_1 = arith.constant 0 : i32
    return %c0_i32, %c0_i32_0 : i32, i32
  }
  func.func @transform_5(%arg0: i32) -> (i32, i32) {
    %c0_i32 = arith.constant 0 : i32
    %c0_i32_0 = arith.constant 0 : i32
    %c0_i32_1 = arith.constant 0 : i32
    return %c0_i32, %c0_i32_0 : i32, i32
  }
  func.func @transform_6(%arg0: i32) -> (i32, i32) {
    %c0_i32 = arith.constant 0 : i32
    %c0_i32_0 = arith.constant 0 : i32
    %c0_i32_1 = arith.constant 0 : i32
    return %c0_i32, %c0_i32_0 : i32, i32
  }
  func.func @transform_7(%arg0: i32) -> (i32, i32) {
    %c0_i32 = arith.constant 0 : i32
    %c0_i32_0 = arith.constant 0 : i32
    return %arg0, %c0_i32 : i32, i32
  }
}

</mosaic_0001>

<bundles_post_ra>
// kernel: swiglu_ffn.1
= control target key start
LH: loop header
LB: loop body
LE: loop exit
PB: predicated region body
PF: predicated region fallthrough
CT: control target
= control target key end

     0   :  { %v565_v7 = vmov 0.0   ;;  %s838_s0 = inlined_call_operand.vmem [shape: f32[16,64], index: 0, kind: input, shape index: {}]   ;;  %s839_s1 = inlined_call_operand.vmem [shape: f32[64,256], index: 1, kind: input, shape index: {}]   ;;  %s840_s2 = inlined_call_operand.vmem [shape: f32[64,256], index: 2, kind: input, shape index: {}]   ;;  %s841_s3 = inlined_call_operand.vmem [shape: f32[1,256], index: 3, kind: input, shape index: {}]   ;;  %s842_s4 = inlined_call_operand.vmem [shape: f32[1,256], index: 4, kind: input, shape index: {}]   ;;  %s843_s5 = inlined_call_operand.vmem [shape: f32[256,64], index: 5, kind: input, shape index: {}]   ;;  %s844_s6 = inlined_call_operand.vmem [shape: f32[1,64], index: 6, kind: input, shape index: {}]   ;;  %s845_s7 = inlined_call_operand.hbm [shape: f32[16,64], index: 7, kind: output, shape index: {}]  }
   0x1   :  { %v30_v0 = vld [vmem:[%s839_s1 + $0x8] sm:$0xff]  ;;  %v32_v1 = vld [vmem:[%s839_s1 + $0x18] sm:$0xff]  ;;  %v29_v2 = vld [vmem:[%s839_s1] sm:$0xff]  ;;  %128 = vmatprep.mubr.f32.mxu1 %v565_v7 }
   0x2   :  { %v457_v3 = vpack.c.bf16 %v32_v1, %v30_v0  ;;  %v31_v4 = vld [vmem:[%s839_s1 + $0x10] sm:$0xff]  ;;  %v34_v5 = vld [vmem:[%s839_s1 + $0x28] sm:$0xff]  ;;  %v36_v6 = vld [vmem:[%s839_s1 + $0x38] sm:$0xff] }
   0x3   :  { %v459_v8 = vpack.c.bf16 %v31_v4, %v29_v2  ;;  %v461_v9 = vpack.c.bf16 %v36_v6, %v34_v5  ;;  %v33_v10 = vld [vmem:[%s839_s1 + $0x20] sm:$0xff]  ;;  %v35_v11 = vld [vmem:[%s839_s1 + $0x30] sm:$0xff]  ;;  %v38_v12 = vld [vmem:[%s839_s1 + $0x48] sm:$0xff] }
   0x4   :  { %458 = vmatprep.subr.bf16.mxu1 %v457_v3  ;;  %v40_v13 = vld [vmem:[%s839_s1 + $0x58] sm:$0xff]  ;;  %v463_v14 = vpack.c.bf16 %v35_v11, %v33_v10  ;;  %v37_v16 = vld [vmem:[%s839_s1 + $0x40] sm:$0xff]  ;;  %v39_v17 = vld [vmem:[%s839_s1 + $0x50] sm:$0xff] }
   0x5   :  { %460 = vmatpush1.bf16.msra.mxu1 %v459_v8  ;;  %v465_v15 = vpack.c.bf16 %v40_v13, %v38_v12  ;;  %v42_v18 = vld [vmem:[%s839_s1 + $0x68] sm:$0xff]  ;;  %v44_v19 = vld [vmem:[%s839_s1 + $0x78] sm:$0xff]  ;;  %v467_v20 = vpack.c.bf16 %v39_v17, %v37_v16  ;;  %v41_v22 = vld [vmem:[%s839_s1 + $0x60] sm:$0xff] }
   0x6   :  { %462 = vmatprep.subr.bf16.mxu1 %v461_v9  ;;  %v469_v21 = vpack.c.bf16 %v44_v19, %v42_v18  ;;  %v43_v23 = vld [vmem:[%s839_s1 + $0x70] sm:$0xff]  ;;  %v142_v24 = vld [vmem:[%s840_s2 + $0x8] sm:$0xff]  ;;  %v144_v25 = vld [vmem:[%s840_s2 + $0x18] sm:$0xff] }
   0x9   :  { %464 = vmatpush1.bf16.msra.mxu1 %v463_v14 }
   0xa   :  { %466 = vmatprep.subr.bf16.mxu1 %v465_v15 }
   0xb   :  { %12 = vsyncpa [#allocation3], 0  ;;  %v471_v26 = vpack.c.bf16 %v43_v23, %v41_v22  ;;  %v473_v27 = vpack.c.bf16 %v144_v25, %v142_v24  ;;  %v141_v28 = vld [vmem:[%s840_s2] sm:$0xff]  ;;  %v143_v29 = vld [vmem:[%s840_s2 + $0x10] sm:$0xff]  ;;  %vm57_vm0 = vcmask 523264   ;;  %s566_s11 = smov [#allocation2]  }
   0xc   :  { %v146_v30 = vld [vmem:[%s840_s2 + $0x28] sm:$0xff]  ;;  %v148_v31 = vld [vmem:[%s840_s2 + $0x38] sm:$0xff]  ;;  %v27_v32 = vld [vmem:[%s838_s0] sm:$0xff]  ;;  %v475_v33 = vpack.c.bf16 %v143_v29, %v141_v28  ;;  %s399_s12 = sshll.u32 %s566_s11, 4  ;;  %s400_s12 = int_to_ptr.vmem [resolvable:$true] %s399_s12 }
   0xd   :  { %468 = vmatpush1.bf16.msra.mxu1 %v467_v20  ;;  %v477_v34 = vpack.c.bf16 %v148_v31, %v146_v30  ;;  %v145_v35 = vld [vmem:[%s840_s2 + $0x20] sm:$0xff]  ;;  %v147_v36 = vld [vmem:[%s840_s2 + $0x30] sm:$0xff]  ;;  %v150_v37 = vld [vmem:[%s840_s2 + $0x48] sm:$0xff]  ;;  %s541_s13 = scalar_lea.vmem %s400_s12, 256  ;;  %p546_p1 = scmp.lt.s32.totalorder %s400_s12, %s400_s12 }
   0xe   :  { %470 = vmatprep.subr.bf16.mxu1 %v469_v21  ;;  %v152_v38 = vld [vmem:[%s840_s2 + $0x58] sm:$0xff]  ;;  %v28_v39 = vld [vmem:[%s838_s0 + $0x8] sm:$0xff]  ;;  %v479_v40 = vpack.c.bf16 %v147_v36, %v145_v35  ;;  %v149_v42 = vld [vmem:[%s840_s2 + $0x40] sm:$0xff]  ;;  %v47_v35 = vlaneseq  ;;  %p542_p0 = scmp.ne.s32.totalorder %s400_s12, %s541_s13  ;;  %p547_p2 = scmp.lt.s32.totalorder %s541_s13, %s541_s13 }
   0xf   :  { %v481_v41 = vpack.c.bf16 %v152_v38, %v150_v37  ;;  %v151_v43 = vld [vmem:[%s840_s2 + $0x50] sm:$0xff]  ;;  %v154_v44 = vld [vmem:[%s840_s2 + $0x68] sm:$0xff]  ;;  %v156_v45 = vld [vmem:[%s840_s2 + $0x78] sm:$0xff] }
  0x10   :  { %v483_v46 = vpack.c.bf16 %v151_v43, %v149_v42  ;;  %v485_v47 = vpack.c.bf16 %v156_v45, %v154_v44  ;;  %v153_v48 = vld [vmem:[%s840_s2 + $0x60] sm:$0xff]  ;;  %v155_v49 = vld [vmem:[%s840_s2 + $0x70] sm:$0xff]  ;;  %v295_v52 = vld [vmem:[%s843_s5 + $0x88] sm:$0xff]  ;;  %v48_v36 = vshrl.u32 %v47_v35, 7  ;;  %p548_p3 = por %p547_p2, %p546_p1 }
  0x11   :  { %472 = vmatpush1.bf16.msra.mxu1 %v471_v26  ;;  %v487_v50 = vpack.c.bf16 %v155_v49, %v153_v48  ;;  %v294_v51 = vld [vmem:[%s843_s5 + $0x80] sm:$0xff]  ;;  %v279_v55 = vld [vmem:[%s843_s5 + $0x8] sm:$0xff]  ;;  %v296_v57 = vld [vmem:[%s843_s5 + $0x90] sm:$0xff] }
  0x12   :  { %474 = vmatprep.subr.bf16.mxu1 %v473_v27  ;;  %v489_v53 = vpack.c.bf16 %v295_v52, %v294_v51  ;;  %v278_v54 = vld [vmem:[%s843_s5] sm:$0xff]  ;;  %v297_v58 = vld [vmem:[%s843_s5 + $0x98] sm:$0xff]  ;;  %v280_v60 = vld [vmem:[%s843_s5 + $0x10] sm:$0xff]  ;;  %v49_v37 = vsub.s32 0, %v48_v36  ;;  %p549_p4 = pnand %p548_p3, %p542_p0 }
  0x13   :  { %v491_v56 = vpack.c.bf16 %v279_v55, %v278_v54  ;;  %v493_v59 = vpack.c.bf16 %v297_v58, %v296_v57  ;;  %v281_v61 = vld [vmem:[%s843_s5 + $0x18] sm:$0xff]  ;;  %v298_v63 = vld [vmem:[%s843_s5 + $0xa0] sm:$0xff]  ;;  %v299_v0 = vld [vmem:[%s843_s5 + $0xa8] sm:$0xff] }
  0x14   :  { %410 = vmatmul.mubr.msk.f32.vlgmr.msra.gmra.mrb[0].mxu1 %vm57_vm0, %v27_v32  ;;  %490 = vmatprep.subr.bf16.mxu0 %v489_v53  ;;  %v495_v62 = vpack.c.bf16 %v281_v61, %v280_v60  ;;  %v497_v1 = vpack.c.bf16 %v299_v0, %v298_v63  ;;  %v282_v2 = vld [vmem:[%s843_s5 + $0x20] sm:$0xff]  ;;  %v283_v3 = vld [vmem:[%s843_s5 + $0x28] sm:$0xff]  ;;  %v300_v5 = vld [vmem:[%s843_s5 + $0xb0] sm:$0xff] }
  0x15   :  { %134 = vmatprep.mubr.f32.mxu1 %v565_v7  ;;  %476 = vmatpush1.bf16.msra.mxu1 %v475_v33  ;;  %v499_v4 = vpack.c.bf16 %v283_v3, %v282_v2  ;;  %v301_v6 = vld [vmem:[%s843_s5 + $0xb8] sm:$0xff]  ;;  %v284_v8 = vld [vmem:[%s843_s5 + $0x30] sm:$0xff]  ;;  %v302_v11 = vld [vmem:[%s843_s5 + $0xc0] sm:$0xff] }
  0x16   :  { %478 = vmatprep.subr.bf16.mxu1 %v477_v34  ;;  %492 = vmatpush3.bf16.msra.mxu0 %v491_v56  ;;  %v285_v9 = vld [vmem:[%s843_s5 + $0x38] sm:$0xff]  ;;  %v303_v12 = vld [vmem:[%s843_s5 + $0xc8] sm:$0xff]  ;;  %v286_v14 = vld [vmem:[%s843_s5 + $0x40] sm:$0xff] }
  0x17   :  { %494 = vmatprep.subr.bf16.mxu0 %v493_v59  ;;  %v503_v10 = vpack.c.bf16 %v285_v9, %v284_v8  ;;  %v505_v13 = vpack.c.bf16 %v303_v12, %v302_v11  ;;  %v287_v15 = vld [vmem:[%s843_s5 + $0x48] sm:$0xff]  ;;  %v304_v17 = vld [vmem:[%s843_s5 + $0xd0] sm:$0xff]  ;;  %v305_v18 = vld [vmem:[%s843_s5 + $0xd8] sm:$0xff] }
  0x18   :  { %411 = vmatmul.mubr.msk.f32.gmra.mrb[2].mxu1 %vm57_vm0, %v28_v39  ;;  %v507_v16 = vpack.c.bf16 %v287_v15, %v286_v14  ;;  %v509_v19 = vpack.c.bf16 %v305_v18, %v304_v17  ;;  %v288_v20 = vld [vmem:[%s843_s5 + $0x50] sm:$0xff]  ;;  %v289_v21 = vld [vmem:[%s843_s5 + $0x58] sm:$0xff]  ;;  %v306_v23 = vld [vmem:[%s843_s5 + $0xe0] sm:$0xff] }
  0x19   :  { %480 = vmatpush1.bf16.msra.mxu1 %v479_v40  ;;  %233 = vmatprep.mubr.f32.mxu1 %v565_v7  ;;  %v511_v22 = vpack.c.bf16 %v289_v21, %v288_v20  ;;  %v307_v24 = vld [vmem:[%s843_s5 + $0xe8] sm:$0xff]  ;;  %v290_v26 = vld [vmem:[%s843_s5 + $0x60] sm:$0xff]  ;;  %v308_v29 = vld [vmem:[%s843_s5 + $0xf0] sm:$0xff] }
  0x1a   :  { %482 = vmatprep.subr.bf16.mxu1 %v481_v41  ;;  %496 = vmatpush3.bf16.msra.mxu0 %v495_v62  ;;  %v513_v25 = vpack.c.bf16 %v307_v24, %v306_v23  ;;  %v291_v27 = vld [vmem:[%s843_s5 + $0x68] sm:$0xff]  ;;  %v309_v30 = vld [vmem:[%s843_s5 + $0xf8] sm:$0xff]  ;;  %v45_v38 = vld [vmem:[%s841_s3] sm:$0x3] }
  0x1b   :  { %498 = vmatprep.subr.bf16.mxu0 %v497_v1  ;;  %v515_v28 = vpack.c.bf16 %v291_v27, %v290_v26  ;;  %v517_v31 = vpack.c.bf16 %v309_v30, %v308_v29  ;;  %v293_v33 = vld [vmem:[%s843_s5 + $0x78] sm:$0xff]  ;;  %v50_v40 = vrot.slane %v45_v38, %v49_v37  ;;  %v157_v63 = vld [vmem:[%s842_s4] sm:$0x3] }
  0x1c   :  { %v162_v3 = vrot.slane %v157_v63, %v49_v37 }
  0x1d   :  { %484 = vmatpush1.bf16.msra.mxu1 %v483_v46 }
  0x1e   :  { %486 = vmatprep.subr.bf16.mxu1 %v485_v47  ;;  %500 = vmatpush3.bf16.msra.mxu0 %v499_v4 }
  0x21   :  { %488 = vmatpush1.bf16.msra.mxu1 %v487_v50 }
  0x24   :  { %412 = vmatmul.mubr.msk.f32.vlgmr.msra.gmra.mrb[4].mxu1 %vm57_vm0, %v27_v32  ;;  %v292_v32 = vld [vmem:[%s843_s5 + $0x70] sm:$0xff] }
  0x25   :  { %239 = vmatprep.mubr.f32.mxu1 %v565_v7  ;;  %v501_v7 = vpack.c.bf16 %v301_v6, %v300_v5  ;;  %v519_v34 = vpack.c.bf16 %v293_v33, %v292_v32 }
  0x27   :  { %502 = vmatprep.subr.bf16.mxu0 %v501_v7 }
  0x28   :  { %413 = vmatmul.mubr.msk.f32.gmra.mrb[6].mxu1 %vm57_vm0, %v28_v39  ;;  %504 = vmatpush3.bf16.msra.mxu0 %v503_v10  ;;  %v53_v39 = vsub.s32 1, %v48_v36 }
  0x29   :  { %506 = vmatprep.subr.bf16.mxu0 %v505_v13 }
  0x2a   :  { %v54_v41 = vrot.slane %v45_v38, %v53_v39  ;;  %v166_v4 = vrot.slane %v157_v63, %v53_v39 }
  0x2c   :  { %508 = vmatpush3.bf16.msra.mxu0 %v507_v16 }
  0x2d   :  { %510 = vmatprep.subr.bf16.mxu0 %v509_v19 }
  0x30   :  { %512 = vmatpush3.bf16.msra.mxu0 %v511_v22  ;;  %v418_v22 = vld [vmem:[%s844_s6] ss:$0 sm:$0xff] }
  0x31   :  { %514 = vmatprep.subr.bf16.mxu0 %v513_v25 }
  0x34   :  { %516 = vmatpush3.bf16.msra.mxu0 %v515_v28 }
  0x35   :  { %518 = vmatprep.subr.bf16.mxu0 %v517_v31 }
  0x38   :  { %520 = vmatpush3.bf16.msra.mxu0 %v519_v34 }
  0xe7   :  { %v130_v42 = vpop.f32.mrb[0].mxu1 }
  0xe8   :  { %v131_v43 = vadd.f32 %v130_v42, %v50_v40  ;;  %v132_v44 = vpop.f32.mrb[1].mxu1 }
  0xe9   :  { %v133_v45 = vadd.f32 %v132_v44, %v54_v41 }
  0xea   :  { %v414_v46 = vmul.f32 -1.442695, %v131_v43 }
  0xeb   :  { %v415_v47 = vmul.f32 -1.442695, %v133_v45  ;;  %v136_v48 = vpop.f32.mrb[2].mxu1 }
  0xec   :  { %525 = vpow2.f32 %v414_v46  ;;  %v137_v49 = vadd.f32 %v136_v48, %v50_v40  ;;  %v138_v50 = vpop.f32.mrb[3].mxu1 }
  0xed   :  { %527 = vpow2.f32 %v415_v47  ;;  %v139_v51 = vadd.f32 %v138_v50, %v54_v41 }
  0xee   :  { %v416_v52 = vmul.f32 -1.442695, %v137_v49 }
  0xef   :  { %v417_v53 = vmul.f32 -1.442695, %v139_v51 }
  0xf0   :  { %529 = vpow2.f32 %v416_v52 }
  0xf1   :  { %531 = vpow2.f32 %v417_v53 }
  0xf6   :  { %v526_v54 = vpop.eup %525 }
  0xf7   :  { %v528_v55 = vpop.eup %527  ;;  %v258_v56 = vadd.f32 1.0, %v526_v54  ;;  %v235_v57 = vpop.f32.mrb[4].mxu1 }
  0xf8   :  { %v259_v58 = vadd.f32 1.0, %v528_v55  ;;  %v237_v59 = vpop.f32.mrb[5].mxu1  ;;  %v236_v5 = vadd.f32 %v235_v57, %v162_v3 }
  0xf9   :  { %533 = vrcp.f32 %v258_v56  ;;  %v238_v7 = vadd.f32 %v237_v59, %v166_v4 }
  0xfa   :  { %v530_v60 = vpop.eup %529  ;;  %535 = vrcp.f32 %v259_v58 }
  0xfb   :  { %v532_v61 = vpop.eup %531  ;;  %v260_v62 = vadd.f32 1.0, %v530_v60  ;;  %v241_v0 = vpop.f32.mrb[6].mxu1 }
  0xfc   :  { %v261_v1 = vadd.f32 1.0, %v532_v61  ;;  %v243_v2 = vpop.f32.mrb[7].mxu1  ;;  %v242_v12 = vadd.f32 %v241_v0, %v162_v3 }
  0xfd   :  { %537 = vrcp.f32 %v260_v62  ;;  %v244_v14 = vadd.f32 %v243_v2, %v166_v4 }
  0xfe   :  { %539 = vrcp.f32 %v261_v1 }
 0x103   :  { %v534_v6 = vpop.eup %533 }
 0x104   :  { %v536_v8 = vpop.eup %535  ;;  %v270_v9 = vmul.f32 %v534_v6, %v131_v43 }
 0x105   :  { %v271_v10 = vmul.f32 %v536_v8, %v133_v45 }
 0x106   :  { %v274_v11 = vmul.f32 %v270_v9, %v236_v5 }
 0x107   :  { %v538_v13 = vpop.eup %537  ;;  %v275_v15 = vmul.f32 %v271_v10, %v238_v7 }
 0x108   :  { %v540_v16 = vpop.eup %539  ;;  %v272_v17 = vmul.f32 %v538_v13, %v137_v49 }
 0x109   :  { %v273_v18 = vmul.f32 %v540_v16, %v139_v51  ;;  %381 = vmatprep.mubr.f32.mxu0 %v275_v15 }
 0x10a   :  { %v276_v19 = vmul.f32 %v272_v17, %v242_v12  ;;  %382 = vmatmul.mubr.f32.vlgmr.msra.gmra.mrb[0].mxu0 %v274_v11 }
 0x10b   :  { %v277_v20 = vmul.f32 %v273_v18, %v244_v14 }
 0x10d   :  { %386 = vmatprep.mubr.f32.mxu0 %v277_v20 }
 0x10e   :  { %387 = vmatmul.mubr.f32.gmra.mrb[2].mxu0 %v276_v19 }
 0x1dd   :  { %v451_v21 = vpop.f32.mrb[0].mxu0 }
 0x1de   :  { %v452_v23 = vpop.f32.mrb[1].mxu0 }
 0x1df   :  { %v453_v24 = vadd.f32 %v452_v23, %v451_v21 }
 0x1e1   :  { %v384_v25 = vadd.f32 %v453_v24, %v418_v22  ;;  %v454_v26 = vpop.f32.mrb[2].mxu0 }
 0x1e2   :  { %v455_v27 = vpop.f32.mrb[3].mxu0 }
 0x1e3   :  { %392 = vst.msk [vmem:[#allocation2] sm:$0xff] %vm57_vm0, %v384_v25  ;;  %v456_v28 = vadd.f32 %v455_v27, %v454_v26 }
 0x1e5   :  { %v389_v29 = vadd.f32 %v456_v28, %v418_v22 }
 0x1e7   :  { %393 = vst.msk [vmem:[#allocation2 + $0x8] sm:$0xff] %vm57_vm0, %v389_v29 }
 0x1e8   :  { %552 = shalt.err (!%p549_p4)
}
 0x1e9   :  { %s553_s15 = scalar_lea.hbm %s845_s7, 256 }
 0x1ea   :  { %p554_p5 = scmp.ne.s32.totalorder %s845_s7, %s553_s15  ;;  %p557_p6 = scmp.lt.u32.totalorder %s553_s15, %s845_s7 }
 0x1ec   :  { %p559_p7 = pnand %p557_p6, %p554_p5 }
 0x1ee   :  { %562 = shalt.err (!%p559_p7)
}
 0x1ef   :  { %s567_s18 = smov 128   ;;  %s568_s19 = smov 8  }
 0x1f0   :  { %405 = dma.vmem_to_hbm [thread:$0]  %s400_s12, 256, %s845_s7, [#allocation3], %s567_s18, %s567_s18, %s568_s19  }
 0x1f1   :  { %563 = dma.done.wait [#allocation3], 256  }
 0x1f2   :  { %564 = vsyncadd [#allocation3], 4294967040 }
 0x1f3   :  { %409 = vsyncpa [#allocation3], 1 }

</bundles_post_ra>
